<compile_context>
chip_gen: v7x
topology: tpu7x:2x2x1
jax: 0.10.0
libtpu: 0.0.40
codegen_flags: <defaults>
</compile_context>

<pallas_src>
import jax
import jax.numpy as jnp
from jax import lax
from jax.experimental import pallas as pl
from jax.experimental.pallas import tpu as pltpu


def _mf_kernel(uid_ref, iid_ref, utab_ref, itab_ref, out_ref):
    """One batch tile: gather + multiply + reduce, batch mapped onto lanes.

    uid_ref / iid_ref : (1, TB)       int32   ids for this tile (lane-dense)
    utab_ref          : (F, n_users)  float32 full user table (factors on sublanes)
    itab_ref          : (F, n_items)  float32 full item table
    out_ref           : (1, TB)       float32 dot products for this tile
    """
    tb = uid_ref.shape[1]
    n_users = utab_ref.shape[1]
    n_items = itab_ref.shape[1]

    uids = uid_ref[...]  # (1, TB)
    iids = iid_ref[...]  # (1, TB)

    # One-hot selection matrices: table rows on sublanes, batch on lanes.
    oh_u = (lax.broadcasted_iota(jnp.int32, (n_users, tb), 0) == uids).astype(jnp.float32)
    oh_i = (lax.broadcasted_iota(jnp.int32, (n_items, tb), 0) == iids).astype(jnp.float32)

    # MXU gather: (F, n_rows) @ (n_rows, TB) -> (F, TB).  Exactly one 1.0 per
    # column, so this is an exact row gather done on the matrix unit.
    u_g = jnp.dot(utab_ref[...], oh_u, preferred_element_type=jnp.float32)
    i_g = jnp.dot(itab_ref[...], oh_i, preferred_element_type=jnp.float32)

    # TODO(synk): training-mode dropout would mask/scale u_g, i_g here.
    prod = u_g * i_g                                       # (F, TB) on the VPU
    out_ref[...] = jnp.sum(prod, axis=0, keepdims=True)    # (1, TB) lane-dense store


def matrix_factorization_forward(user_ids, item_ids, user_factors, item_factors, *, tb=128):
    """Pallas equivalent of MatrixFactorization.forward (eval mode).

    user_ids, item_ids : int (B,)
    user_factors       : float32 (n_users, n_factors)
    item_factors       : float32 (n_items, n_factors)
    returns            : float32 (B,)
    """
    B = user_ids.shape[0]
    n_users, n_factors = user_factors.shape
    n_items, _ = item_factors.shape

    b_pad = pl.cdiv(B, tb) * tb
    pad = b_pad - B

    # Lane-dense id tiles; pad with id 0 (valid row), padded outputs are dropped.
    uid2 = jnp.pad(user_ids.astype(jnp.int32), (0, pad)).reshape(1, b_pad)
    iid2 = jnp.pad(item_ids.astype(jnp.int32), (0, pad)).reshape(1, b_pad)

    # Factors on sublanes / rows on lanes so gathered tiles come out (F, TB).
    utab_t = user_factors.astype(jnp.float32).T  # (F, n_users)
    itab_t = item_factors.astype(jnp.float32).T  # (F, n_items)

    flops = 2 * n_factors * (n_users + n_items + 1) * b_pad
    bytes_accessed = 4 * (n_factors * (n_users + n_items) + 3 * b_pad)

    out = pl.pallas_call(
        _mf_kernel,
        out_shape=jax.ShapeDtypeStruct((1, b_pad), jnp.float32),
        grid=(b_pad // tb,),
        in_specs=[
            pl.BlockSpec((1, tb), lambda i: (0, i)),
            pl.BlockSpec((1, tb), lambda i: (0, i)),
            # Whole tables, constant block index -> loaded once, VMEM resident.
            # (For production-size tables switch to a manual HBM DMA gather;
            #  on v7x budget resident tables against 64 MiB VMEM per TC.)
            pl.BlockSpec((n_factors, n_users), lambda i: (0, 0)),
            pl.BlockSpec((n_factors, n_items), lambda i: (0, 0)),
        ],
        out_specs=pl.BlockSpec((1, tb), lambda i: (0, i)),
        compiler_params=pltpu.CompilerParams(
            dimension_semantics=("parallel",),  # independent batch tiles
        ),
        cost_estimate=pl.CostEstimate(
            flops=flops, transcendentals=0, bytes_accessed=bytes_accessed),
    )(uid2, iid2, utab_t, itab_t)

    return out[0, :B]


if __name__ == "__main__":
    # Small, deterministic problem sizes consistent with the module defaults.
    n_users, n_items, n_factors = 32, 48, 20
    batch = 8

    key = jax.random.PRNGKey(0)
    k_u, k_i, k_uid, k_iid = jax.random.split(key, 4)

    # nn.Embedding default init: N(0, 1)
    user_factors = jax.random.normal(k_u, (n_users, n_factors), dtype=jnp.float32)
    item_factors = jax.random.normal(k_i, (n_items, n_factors), dtype=jnp.float32)

    user_ids = jax.random.randint(k_uid, (batch,), 0, n_users, dtype=jnp.int32)
    item_ids = jax.random.randint(k_iid, (batch,), 0, n_items, dtype=jnp.int32)

    out = matrix_factorization_forward(user_ids, item_ids, user_factors, item_factors)
    out = jax.block_until_ready(out)

    # Pure-JAX reference (dropout is identity in eval mode).
    ref = jnp.sum(user_factors[user_ids] * item_factors[item_ids], axis=1)
    assert out.shape == (batch,)
    assert jnp.allclose(out, ref, atol=1e-5, rtol=1e-5), (out, ref)

    print("KERNEL_OK")
</pallas_src>

<mosaic_0001>
module attributes {stable_mosaic.version = 11 : i64} {
  func.func @_mf_kernel(%arg0: i32, %arg1: memref<1x128xi32, #tpu.memory_space<vmem>>, %arg2: memref<1x128xi32, #tpu.memory_space<vmem>>, %arg3: memref<20x32xf32, #tpu.memory_space<vmem>>, %arg4: memref<20x48xf32, #tpu.memory_space<vmem>>, %arg5: memref<1x128xf32, #tpu.memory_space<vmem>>) attributes {dimension_semantics = [#tpu.dimension_semantics<parallel>], iteration_bounds = array<i64: 1>, scalar_prefetch = 0 : i64, scratch_operands = 0 : i64, tpu.core_type = #tpu.core_type<tc>, window_params = [{transform_indices = @transform_0, window_bounds = array<i64: 1, 128>}, {transform_indices = @transform_1, window_bounds = array<i64: 1, 128>}, {pipeline_mode = #tpu.pipeline_mode<synchronous>, transform_indices = @transform_2, window_bounds = array<i64: 20, 32>}, {pipeline_mode = #tpu.pipeline_mode<synchronous>, transform_indices = @transform_3, window_bounds = array<i64: 20, 48>}, {transform_indices = @transform_4, window_bounds = array<i64: 1, 128>}]} {
    %c0 = arith.constant 0 : index
    %c0_0 = arith.constant 0 : index
    %0 = vector.load %arg1[%c0, %c0_0] : memref<1x128xi32, #tpu.memory_space<vmem>>, vector<1x128xi32>
    %c0_1 = arith.constant 0 : index
    %c0_2 = arith.constant 0 : index
    %1 = vector.load %arg2[%c0_1, %c0_2] : memref<1x128xi32, #tpu.memory_space<vmem>>, vector<1x128xi32>
    %2 = tpu.iota {dimensions = array<i32: 0>} : vector<32x128xi32>
    %3 = vector.broadcast %0 : vector<1x128xi32> to vector<32x128xi32>
    %4 = arith.cmpi eq, %2, %3 : vector<32x128xi32>
    %5 = arith.extui %4 : vector<32x128xi1> to vector<32x128xi32>
    %6 = arith.sitofp %5 : vector<32x128xi32> to vector<32x128xf32>
    %7 = tpu.iota {dimensions = array<i32: 0>} : vector<48x128xi32>
    %8 = vector.broadcast %1 : vector<1x128xi32> to vector<48x128xi32>
    %9 = arith.cmpi eq, %7, %8 : vector<48x128xi32>
    %10 = arith.extui %9 : vector<48x128xi1> to vector<48x128xi32>
    %11 = arith.sitofp %10 : vector<48x128xi32> to vector<48x128xf32>
    %c0_3 = arith.constant 0 : index
    %c0_4 = arith.constant 0 : index
    %12 = vector.load %arg3[%c0_3, %c0_4] : memref<20x32xf32, #tpu.memory_space<vmem>>, vector<20x32xf32>
    %cst = arith.constant dense<0.000000e+00> : vector<20x128xf32>
    %13 = tpu.matmul %12, %6, %cst {dimension_numbers = #tpu.dot_dimension_numbers<[1], [0], [0], [1], [0, 0, 1, 1], [], []>} : vector<20x32xf32>, vector<32x128xf32>, vector<20x128xf32> -> vector<20x128xf32>
    %c0_5 = arith.constant 0 : index
    %c0_6 = arith.constant 0 : index
    %14 = vector.load %arg4[%c0_5, %c0_6] : memref<20x48xf32, #tpu.memory_space<vmem>>, vector<20x48xf32>
    %cst_7 = arith.constant dense<0.000000e+00> : vector<20x128xf32>
    %15 = tpu.matmul %14, %11, %cst_7 {dimension_numbers = #tpu.dot_dimension_numbers<[1], [0], [0], [1], [0, 0, 1, 1], [], []>} : vector<20x48xf32>, vector<48x128xf32>, vector<20x128xf32> -> vector<20x128xf32>
    %16 = arith.mulf %13, %15 : vector<20x128xf32>
    %cst_8 = arith.constant dense<0.000000e+00> : vector<128xf32>
    %17 = vector.multi_reduction <add>, %16, %cst_8 [0] : vector<20x128xf32> to vector<128xf32>
    %18 = vector.shape_cast %17 : vector<128xf32> to vector<1x128xf32>
    %c0_9 = arith.constant 0 : index
    %c0_10 = arith.constant 0 : index
    %19 = vector.load %arg5[%c0_9, %c0_10] : memref<1x128xf32, #tpu.memory_space<vmem>>, vector<1x128xf32>
    tpu.vector_store %arg5[%c0_9, %c0_10], %18 {strides = array<i32>} : memref<1x128xf32, #tpu.memory_space<vmem>>, vector<1x128xf32>,
    return
  }
  func.func @transform_0(%arg0: i32) -> (i32, i32) {
    %c0_i32 = arith.constant 0 : i32
    %c0_i32_0 = arith.constant 0 : i32
    return %c0_i32, %arg0 : i32, i32
  }
  func.func @transform_1(%arg0: i32) -> (i32, i32) {
    %c0_i32 = arith.constant 0 : i32
    %c0_i32_0 = arith.constant 0 : i32
    return %c0_i32, %arg0 : i32, i32
  }
  func.func @transform_2(%arg0: i32) -> (i32, i32) {
    %c0_i32 = arith.constant 0 : i32
    %c0_i32_0 = arith.constant 0 : i32
    %c0_i32_1 = arith.constant 0 : i32
    return %c0_i32, %c0_i32_0 : i32, i32
  }
  func.func @transform_3(%arg0: i32) -> (i32, i32) {
    %c0_i32 = arith.constant 0 : i32
    %c0_i32_0 = arith.constant 0 : i32
    %c0_i32_1 = arith.constant 0 : i32
    return %c0_i32, %c0_i32_0 : i32, i32
  }
  func.func @transform_4(%arg0: i32) -> (i32, i32) {
    %c0_i32 = arith.constant 0 : i32
    %c0_i32_0 = arith.constant 0 : i32
    return %c0_i32, %arg0 : i32, i32
  }
}

</mosaic_0001>

<bundles_post_ra>
// kernel: tpu_custom_call.1
= control target key start
LH: loop header
LB: loop body
LE: loop exit
PB: predicated region body
PF: predicated region fallthrough
CT: control target
= control target key end

     0   :  { %9 = vsyncpa [#allocation3], 0  ;;  %s619_s0 = inlined_call_operand.hbm [shape: s32[1,128], index: 0, kind: input, shape index: {}]   ;;  %s620_s1 = inlined_call_operand.vmem [shape: s32[1,128], index: 1, kind: input, shape index: {}]   ;;  %s621_s2 = inlined_call_operand.hbm [shape: f32[20,32], index: 2, kind: input, shape index: {}]   ;;  %s622_s3 = inlined_call_operand.hbm [shape: f32[20,48], index: 3, kind: input, shape index: {}]   ;;  %s623_s4 = inlined_call_operand.hbm [shape: f32[1,128], index: 4, kind: output, shape index: {}]  }
   0x1   :  { %10 = vsyncpa [#allocation6], 0 }
   0x2   :  { %11 = vsyncpa [#allocation4], 0  ;;  %s521_s15 = smov [#allocation5]   ;;  %s427_s19 = scalar_lea.hbm %s621_s2, 384 }
   0x3   :  { %s29_s16 = sshll.u32 %s521_s15, 4  ;;  %p428_p0 = scmp.ne.s32.totalorder %s621_s2, %s427_s19  ;;  %s30_s16 = int_to_ptr.vmem [resolvable:$true] %s29_s16 }
   0x4   :  { %p431_p1 = scmp.lt.u32.totalorder %s427_s19, %s621_s2 }
   0x6   :  { %p433_p2 = pnand %p431_p1, %p428_p0 }
   0x8   :  { %436 = shalt.err (!%p433_p2)
}
   0x9   :  { %s437_s24 = scalar_lea.vmem %s30_s16, 384  ;;  %p442_p4 = scmp.lt.s32.totalorder %s30_s16, %s30_s16 }
   0xa   :  { %p438_p3 = scmp.ne.s32.totalorder %s30_s16, %s437_s24  ;;  %p443_p5 = scmp.lt.s32.totalorder %s437_s24, %s437_s24 }
   0xc   :  { %p444_p6 = por %p443_p5, %p442_p4 }
   0xe   :  { %p445_p7 = pnand %p444_p6, %p438_p3 }
  0x10   :  { %448 = shalt.err (!%p445_p7)
}
  0x11   :  { %s522_s25 = smov 128   ;;  %s523_s26 = smov 8  }
  0x12   :  { %35 = dma.hbm_to_vmem [thread:$0]  %s621_s2, 384, %s30_s16, [#allocation6], %s522_s25, %s522_s25, %s523_s26  }
  0x13   :  { %s524_s29 = smov [#allocation2]   ;;  %s525_s5 = smov [#allocation7]  }
  0x14   :  { %s18_s30 = sshll.u32 %s524_s29, 4  ;;  %s41_s6 = sshll.u32 %s525_s5, 4  ;;  %s19_s30 = int_to_ptr.vmem [resolvable:$true] %s18_s30  ;;  %s42_s6 = int_to_ptr.vmem [resolvable:$true] %s41_s6 }
  0x15   :  { %s449_s9 = scalar_lea.hbm %s619_s0, 16 }
  0x16   :  { %p450_p8 = scmp.ne.s32.totalorder %s619_s0, %s449_s9  ;;  %p453_p9 = scmp.lt.u32.totalorder %s449_s9, %s619_s0 }
  0x18   :  { %p455_p10 = pnand %p453_p9, %p450_p8 }
  0x1a   :  { %458 = shalt.err (!%p455_p10)
}
  0x1b   :  { %s459_s2 = scalar_lea.vmem %s19_s30, 16  ;;  %s463_s14 = scalar_lea.vmem %s19_s30, 32 }
  0x1c   :  { %p460_p11 = scmp.ne.s32.totalorder %s19_s30, %s459_s2  ;;  %p464_p12 = scmp.lt.s32.totalorder %s19_s30, %s19_s30 }
  0x1d   :  { %p465_p13 = scmp.lt.s32.totalorder %s463_s14, %s459_s2 }
  0x1f   :  { %p466_p0 = por %p465_p13, %p464_p12 }
  0x21   :  { %p467_p1 = pnand %p466_p0, %p460_p11 }
  0x23   :  { %470 = shalt.err (!%p467_p1)
}
  0x24   :  { %21 = dma.hbm_to_vmem [thread:$0]  %s619_s0, 16, %s19_s30, [#allocation3]  }
  0x25   :  { %s471_s19 = scalar_lea.hbm %s622_s3, 384 }
  0x26   :  { %p472_p2 = scmp.ne.s32.totalorder %s622_s3, %s471_s19  ;;  %p475_p3 = scmp.lt.u32.totalorder %s471_s19, %s622_s3 }
  0x28   :  { %p477_p4 = pnand %p475_p3, %p472_p2 }
  0x2a   :  { %480 = shalt.err (!%p477_p4)
}
  0x2b   :  { %s481_s24 = scalar_lea.vmem %s42_s6, 384  ;;  %p486_p6 = scmp.lt.s32.totalorder %s42_s6, %s42_s6 }
  0x2c   :  { %p482_p5 = scmp.ne.s32.totalorder %s42_s6, %s481_s24  ;;  %p487_p7 = scmp.lt.s32.totalorder %s481_s24, %s481_s24 }
  0x2e   :  { %p488_p8 = por %p487_p7, %p486_p6 }
  0x30   :  { %p489_p9 = pnand %p488_p8, %p482_p5 }
  0x32   :  { %492 = shalt.err (!%p489_p9)
}
  0x33   :  { %47 = dma.hbm_to_vmem [thread:$0]  %s622_s3, 384, %s42_s6, [#allocation6], %s522_s25, %s522_s25, %s523_s26  }
  0x34   :  { %515 = dma.done.wait [#allocation3], 16  }
  0x35   :  { %516 = vsyncadd [#allocation3], 4294967280 }
  0x36   :  { %517 = dma.done.wait [#allocation6], 768  }
  0x37   :  { %518 = vsyncadd [#allocation6], 4294966528  ;;  %v59_v0 = vlaneseq  ;;  %v526_v1 = vmov 0.0|0.0   ;;  %vm527_vm0 = vmmov 0   ;;  %v528_v3 = vmov 0.0   ;;  %v104_v12 = vld [vmem:[#allocation5] sm:$0xff] }
  0x38   :  { %408 = vmatprep.subr.bf16.mxu1 %v526_v1  ;;  %402 = vmatprep.subr.bf16.mxu0 %v526_v1  ;;  %v325_v7 = vld [vmem:[%s620_s1] ss:$0 sm:$0xff]  ;;  %v529_v11 = vmov 1.0|1.0   ;;  %v105_v14 = vld [vmem:[#allocation5 + $0x8] sm:$0xff]  ;;  %v198_v15 = vld [vmem:[#allocation7 + $0x8] sm:$0xff] }
  0x39   :  { %v60_v2 = vshrl.u32 %v59_v0, 7  ;;  %372 = vmatprep.mubr.msk.f32.mxu0 %vm527_vm0, %v528_v3  ;;  %393 = vmatprep.mubr.msk.f32.mxu1 %vm527_vm0, %v528_v3  ;;  %v320_v8 = vld [vmem:[#allocation2] ss:$0 sm:$0xff]  ;;  %v106_v16 = vld [vmem:[#allocation5 + $0x10] sm:$0xf]  ;;  %s530_s1 = smov [#allocation8]  }
  0x3a   :  { %v197_v13 = vld [vmem:[#allocation7] sm:$0xff]  ;;  %v199_v17 = vld [vmem:[#allocation7 + $0x10] sm:$0xf]  ;;  %s310_s25 = sshll.u32 %s530_s1, 4  ;;  %s311_s25 = int_to_ptr.vmem [resolvable:$true] %s310_s25 }
  0x3b   :  { %v61_v4 = vadd.s32 8, %v60_v2  ;;  %v62_v5 = vadd.s32 16, %v60_v2  ;;  %v63_v6 = vadd.s32 24, %v60_v2  ;;  %v80_v9 = vadd.s32 32, %v60_v2  ;;  %s493_s26 = scalar_lea.vmem %s311_s25, 16  ;;  %s497_s29 = scalar_lea.vmem %s311_s25, 32 }
  0x3c   :  { %v81_v10 = vadd.s32 40, %v60_v2  ;;  %vm86_vm1 = vcmp.eq.s32.totalorder %v60_v2, %v325_v7  ;;  %vm68_vm3 = vcmp.eq.s32.totalorder %v60_v2, %v320_v8  ;;  %p494_p10 = scmp.ne.s32.totalorder %s311_s25, %s493_s26  ;;  %p498_p11 = scmp.lt.s32.totalorder %s311_s25, %s311_s25 }
  0x3d   :  { %vm87_vm2 = vcmp.eq.s32.totalorder %v61_v4, %v325_v7  ;;  %vm69_vm4 = vcmp.eq.s32.totalorder %v61_v4, %v320_v8  ;;  %vm88_vm6 = vcmp.eq.s32.totalorder %v62_v5, %v325_v7  ;;  %vm89_vm7 = vcmp.eq.s32.totalorder %v63_v6, %v325_v7  ;;  %p499_p12 = scmp.lt.s32.totalorder %s497_s29, %s493_s26 }
  0x3e   :  { %vm409_vm5 = vmpackc.low %vm87_vm2, %vm86_vm1  ;;  %vm70_vm8 = vcmp.eq.s32.totalorder %v62_v5, %v320_v8  ;;  %vm71_vm9 = vcmp.eq.s32.totalorder %v63_v6, %v320_v8  ;;  %vm90_vm13 = vcmp.eq.s32.totalorder %v80_v9, %v325_v7  ;;  %vm91_vm14 = vcmp.eq.s32.totalorder %v81_v10, %v325_v7 }
  0x3f   :  { %410 = vmatpush3.bf16.msk.msra.mxu1 %vm409_vm5, %v529_v11  ;;  %vm403_vm10 = vmpackc.low %vm69_vm4, %vm68_vm3  ;;  %vm107_vm1 = vcmask 261120   ;;  %vm200_vm2 = vcmask 392192   ;;  %vm294_vm3 = vcmask 1043456   ;;  %p500_p13 = por %p499_p12, %p498_p11 }
  0x40   :  { %404 = vmatpush3.bf16.msk.msra.mxu0 %vm403_vm10, %v529_v11  ;;  %411 = vmatprep.subr.bf16.mxu1 %v526_v1  ;;  %vm412_vm11 = vmpackc.low %vm89_vm7, %vm88_vm6 }
  0x41   :  { %405 = vmatprep.subr.bf16.mxu0 %v526_v1  ;;  %vm406_vm12 = vmpackc.low %vm71_vm9, %vm70_vm8  ;;  %p501_p0 = pnand %p500_p13, %p494_p10 }
  0x42   :  { %vm415_vm15 = vmpackc.low %vm91_vm14, %vm90_vm13 }
  0x43   :  { %413 = vmatpush3.bf16.msk.msra.mxu1 %vm412_vm11, %v529_v11 }
  0x44   :  { %407 = vmatpush3.bf16.msk.msra.mxu0 %vm406_vm12, %v529_v11  ;;  %414 = vmatprep.subr.bf16.mxu1 %v526_v1 }
  0x47   :  { %416 = vmatpush3.bf16.msk.msra.mxu1 %vm415_vm15, %v529_v11  ;;  %373 = vmatmul.mubr.msk.f32.vlgmr.msra.gmra.mrb[0].mxu0 %vm107_vm1, %v104_v12 }
  0x48   :  { %375 = vmatprep.mubr.msk.f32.mxu0 %vm527_vm0, %v528_v3 }
  0x4a   :  { %394 = vmatmul.mubr.msk.f32.vlgmr.msra.gmra.mrb[0].mxu1 %vm200_vm2, %v197_v13 }
  0x4b   :  { %376 = vmatmul.mubr.msk.f32.gmra.mrb[2].mxu0 %vm107_vm1, %v105_v14  ;;  %396 = vmatprep.mubr.msk.f32.mxu1 %vm527_vm0, %v528_v3 }
  0x4c   :  { %378 = vmatprep.mubr.msk.f32.mxu0 %vm527_vm0, %v528_v3 }
  0x4e   :  { %397 = vmatmul.mubr.msk.f32.gmra.mrb[2].mxu1 %vm200_vm2, %v198_v15 }
  0x4f   :  { %379 = vmatmul.mubr.msk.f32.gmra.mrb[4].mxu0 %vm107_vm1, %v106_v16  ;;  %399 = vmatprep.mubr.msk.f32.mxu1 %vm527_vm0, %v528_v3 }
  0x52   :  { %400 = vmatmul.mubr.msk.f32.gmra.mrb[4].mxu1 %vm200_vm2, %v199_v17 }
 0x11a   :  { %v183_v18 = vpop.f32.mrb[0].mxu0 }
 0x11b   :  { %v374_v19 = vpop.f32.mrb[1].mxu0 }
 0x11d   :  { %v276_v20 = vpop.f32.mrb[0].mxu1 }
 0x11e   :  { %v290_v21 = vmul.f32 %v276_v20, %v183_v18  ;;  %v395_v22 = vpop.f32.mrb[1].mxu1  ;;  %v188_v23 = vpop.f32.mrb[2].mxu0 }
 0x11f   :  { %v377_v24 = vpop.f32.mrb[3].mxu0 }
 0x121   :  { %v281_v25 = vpop.f32.mrb[2].mxu1 }
 0x122   :  { %v291_v26 = vmul.f32 %v281_v25, %v188_v23  ;;  %v398_v27 = vpop.f32.mrb[3].mxu1  ;;  %v193_v28 = vpop.f32.mrb[4].mxu0 }
 0x123   :  { %v380_v29 = vpop.f32.mrb[5].mxu0 }
 0x124   :  { %v293_v30 = vadd.f32 %v291_v26, %v290_v21 }
 0x125   :  { %v286_v31 = vpop.f32.mrb[4].mxu1 }
 0x126   :  { %v292_v32 = vmul.f32 %v286_v31, %v193_v28  ;;  %v401_v33 = vpop.f32.mrb[5].mxu1 }
 0x128   :  { %v295_v34 = vsel %vm294_vm3, %v292_v32, 0.0 }
 0x129   :  { %v296_v35 = vadd.f32 %v295_v34, %v293_v30 }
 0x12b   :  { %v297_v36 = vrot.slane %v296_v35, 4 }
 0x12d   :  { %v298_v37 = vadd.f32 %v297_v36, %v296_v35 }
 0x12f   :  { %v299_v38 = vrot.slane %v298_v37, 2 }
 0x131   :  { %v300_v39 = vadd.f32 %v299_v38, %v298_v37 }
 0x133   :  { %v301_v40 = vrot.slane %v300_v39, 1 }
 0x135   :  { %v302_v41 = vadd.f32 %v301_v40, %v300_v39 }
 0x137   :  { %303 = vst [vmem:[#allocation8] sm:$0x1] %v302_v41 }
 0x138   :  { %504 = shalt.err (!%p501_p0)
}
 0x139   :  { %s505_s6 = scalar_lea.hbm %s623_s4, 16 }
 0x13a   :  { %p506_p1 = scmp.ne.s32.totalorder %s623_s4, %s505_s6  ;;  %p509_p2 = scmp.lt.u32.totalorder %s505_s6, %s623_s4 }
 0x13c   :  { %p511_p3 = pnand %p509_p2, %p506_p1 }
 0x13e   :  { %514 = shalt.err (!%p511_p3)
}
 0x13f   :  { %313 = dma.vmem_to_hbm [thread:$0]  %s311_s25, 16, %s623_s4, [#allocation4]  }
 0x140   :  { %519 = dma.done.wait [#allocation4], 16  }
 0x141   :  { %520 = vsyncadd [#allocation4], 4294967280 }
 0x142   :  { %317 = vsyncpa [#allocation3], 1 }
 0x143   :  { %318 = vsyncpa [#allocation6], 1 }
 0x144   :  { %319 = vsyncpa [#allocation4], 1 }

</bundles_post_ra>
